<compile_context>
chip_gen: v5e
topology: v5e:2x2
jax: 0.10.0
libtpu: 0.0.40
codegen_flags: <defaults>
</compile_context>

<pallas_src>
import math

import jax
import jax.numpy as jnp
import numpy as np
from jax import lax
from jax.experimental import pallas as pl
from jax.experimental.pallas import tpu as pltpu


def _make_sdpa_kernel(scale, write_weights, masked):
    def kernel(*refs):
        if masked:
            q_ref, k_ref, v_ref, vl_ref = refs[:4]
            out_refs = refs[4:]
        else:
            q_ref, k_ref, v_ref = refs[:3]
            out_refs = refs[3:]
        o_ref = out_refs[0]

        # Scale q in its native dtype (cheaper than scaling the f32 scores and
        # keeps the MXU fed in the input dtype, e.g. bf16).
        q = q_ref[...] * jnp.asarray(scale, dtype=q_ref.dtype)
        k = k_ref[...]
        v = v_ref[...]

        # QK^T with contraction on the last dim of both operands (no explicit
        # transpose / XLU work), f32 accumulation on the MXU.
        scores = jnp.einsum("bqd,bkd->bqk", q, k,
                            preferred_element_type=jnp.float32)

        if masked:
            vl = vl_ref[...]
            key_ids = lax.broadcasted_iota(jnp.int32, scores.shape, 2)
            scores = jnp.where(key_ids < vl, scores, jnp.float32(-1e6))

        m = jnp.max(scores, axis=-1, keepdims=True)
        e = jnp.exp(scores - m)
        s = jnp.sum(e, axis=-1, keepdims=True)
        inv = pl.reciprocal(s, approx=True)   # EUP vrcp, frees VALU slots

        if write_weights:
            w = e * inv
            out_refs[1][...] = w.astype(out_refs[1].dtype)
            o = jnp.einsum("bqk,bkv->bqv", w.astype(v.dtype), v,
                           preferred_element_type=jnp.float32)
            o_ref[...] = o.astype(o_ref.dtype)
        else:
            # Deferred normalization: e in [0,1] so the cast is safe; the
            # normalizing multiply is (Bb,Q,V) instead of (Bb,Q,K).
            o = jnp.einsum("bqk,bkv->bqv", e.astype(v.dtype), v,
                           preferred_element_type=jnp.float32)
            o_ref[...] = (o * inv).astype(o_ref.dtype)

    return kernel


def _per_batch_vmem_bytes(Q, K, D, V, itemsize, w_itemsize, masked,
                          write_weights):
    """Per-batch-element VMEM footprint of one grid step (incl. pipelining)."""
    io = (Q * D + K * D + K * V + Q * V) * itemsize
    if write_weights:
        io += Q * K * w_itemsize
    if masked:
        # (bb, Q, 1) int32 block: last dim pads 1 -> 128 lanes, Q -> mult of 8.
        io += ((Q + 7) // 8) * 8 * 128 * 4
    total = 2 * io                  # double-buffered pipeline blocks
    total += 3 * Q * K * 4          # f32 intermediates: scores, e, w/iota
    return total


def _chip_config():
    try:
        kind = jax.devices()[0].device_kind.lower()
    except Exception:
        kind = ""
    if "v7" in kind:
        # 2 TensorCores, 64 MiB physical VMEM: tighter per-step budget, keep
        # >= 2 grid steps and prefer an even grid so both cores split cleanly.
        return dict(two_cores=True, target_bytes=20 << 20,
                    vmem_limit=40 << 20)
    # v5e / v6e (or unknown): single TensorCore, 128 MiB physical VMEM.
    # Big blocks (HBM-BW bound kernel) and raise the small scoped default.
    return dict(two_cores=False, target_bytes=14 << 20, vmem_limit=64 << 20)


def _choose_batch_block(B, per_batch_bytes, target_bytes, two_cores):
    """Pick how many batch elements to fuse per grid step."""
    bb_cap = int(max(1, target_bytes // max(per_batch_bytes, 1)))
    if two_cores and B >= 2:
        # Keep at least 2 grid steps so both TensorCores get work.
        bb_cap = max(1, min(bb_cap, B // 2))
    bb_cap = min(bb_cap, B)
    divisors = [d for d in range(1, bb_cap + 1) if B % d == 0]
    if two_cores:
        even = [d for d in divisors if (B // d) % 2 == 0]
        if even:
            return max(even)        # even grid: clean 2-TC split
    return max(divisors)


def dot_product_attention(queries, keys, values, valid_lens=None,
                          return_weights=True, weights_dtype=None):
    """Pallas scaled dot-product attention (eval-mode forward).

    queries: (B, Q, D); keys: (B, K, D); values: (B, K, V)
    valid_lens: None, (B,), or (B, Q)
    Returns output (B, Q, V) and, if return_weights, the attention weights
    (B, Q, K) in weights_dtype (default: queries.dtype).
    """
    B, Q, D = queries.shape
    _, K, _ = keys.shape
    V = values.shape[-1]
    masked = valid_lens is not None
    w_dtype = queries.dtype if weights_dtype is None else jnp.dtype(weights_dtype)

    itemsize = int(np.dtype(queries.dtype).itemsize)
    w_itemsize = int(np.dtype(w_dtype).itemsize)
    cfg = _chip_config()
    per_batch = _per_batch_vmem_bytes(Q, K, D, V, itemsize, w_itemsize,
                                      masked, return_weights)
    bb = _choose_batch_block(B, per_batch, cfg["target_bytes"],
                             cfg["two_cores"])
    grid = (B // bb,)

    scale = 1.0 / math.sqrt(D)
    kernel = _make_sdpa_kernel(scale, return_weights, masked)

    in_specs = [
        pl.BlockSpec((bb, Q, D), lambda b: (b, 0, 0)),
        pl.BlockSpec((bb, K, D), lambda b: (b, 0, 0)),
        pl.BlockSpec((bb, K, V), lambda b: (b, 0, 0)),
    ]
    inputs = [queries, keys, values]
    if masked:
        if valid_lens.ndim == 1:
            vl = jnp.broadcast_to(valid_lens.astype(jnp.int32)[:, None],
                                  (B, Q)).reshape(B, Q, 1)
        else:
            vl = valid_lens.astype(jnp.int32).reshape(B, Q, 1)
        in_specs.append(pl.BlockSpec((bb, Q, 1), lambda b: (b, 0, 0)))
        inputs.append(vl)

    o_shape = jax.ShapeDtypeStruct((B, Q, V), queries.dtype)
    o_spec = pl.BlockSpec((bb, Q, V), lambda b: (b, 0, 0))
    if return_weights:
        out_shape = (o_shape, jax.ShapeDtypeStruct((B, Q, K), w_dtype))
        out_specs = (o_spec, pl.BlockSpec((bb, Q, K), lambda b: (b, 0, 0)))
    else:
        out_shape = o_shape
        out_specs = o_spec

    flops = 2 * B * Q * K * (D + V)
    bytes_accessed = (B * (Q * D + K * D + K * V + Q * V) * itemsize
                      + (B * Q * 4 if masked else 0)
                      + (B * Q * K * w_itemsize if return_weights else 0))
    cost = pl.CostEstimate(flops=flops, transcendentals=B * Q * K,
                           bytes_accessed=bytes_accessed)

    result = pl.pallas_call(
        kernel,
        out_shape=out_shape,
        grid_spec=pltpu.PrefetchScalarGridSpec(
            num_scalar_prefetch=0,
            grid=grid,
            in_specs=in_specs,
            out_specs=out_specs,
        ),
        compiler_params=pltpu.CompilerParams(
            dimension_semantics=("parallel",),
            vmem_limit_bytes=cfg["vmem_limit"]),
        cost_estimate=cost,
    )(*inputs)

    if return_weights:
        return result[0], result[1]
    return result


def _reference(queries, keys, values, valid_lens):
    d = queries.shape[-1]
    scores = jnp.einsum("bqd,bkd->bqk", queries, keys) / math.sqrt(d)
    B, Q, K = scores.shape
    if valid_lens is None:
        vl = jnp.full((B, Q), K, dtype=jnp.int32)
    elif valid_lens.ndim == 1:
        vl = jnp.broadcast_to(valid_lens[:, None], (B, Q)).astype(jnp.int32)
    else:
        vl = valid_lens.astype(jnp.int32)
    key_ids = jnp.arange(K)[None, None, :]
    scores = jnp.where(key_ids < vl[:, :, None], scores, -1e6)
    w = jax.nn.softmax(scores, axis=-1)
    return jnp.einsum("bqk,bkv->bqv", w, values), w


if __name__ == "__main__":
    rng = jax.random.PRNGKey(0)
    k1, k2, k3, k4, k5, k6, k7 = jax.random.split(rng, 7)

    # Case 1: demo shapes from the module, (B,) valid_lens, weights returned.
    B, Q, K, D, V = 2, 8, 8, 32, 32
    q1 = jax.random.normal(k1, (B, Q, D), dtype=jnp.float32)
    ks1 = jax.random.normal(k2, (B, K, D), dtype=jnp.float32)
    v1 = jax.random.normal(k3, (B, K, V), dtype=jnp.float32)
    vl1 = jnp.array([3, 6], dtype=jnp.int32)

    out1, w1 = dot_product_attention(q1, ks1, v1, vl1)
    out1 = jax.block_until_ready(out1)
    w1 = jax.block_until_ready(w1)
    ref_o1, ref_w1 = _reference(q1, ks1, v1, vl1)
    np.testing.assert_allclose(np.asarray(out1), np.asarray(ref_o1),
                               atol=3e-3, rtol=3e-3)
    np.testing.assert_allclose(np.asarray(w1), np.asarray(ref_w1),
                               atol=3e-3, rtol=3e-3)

    # Case 2: larger batch (exercises bb>1 batched blocks), per-query (B, Q)
    # valid_lens, weights output skipped (deferred-normalization path).
    B2, Q2, K2, D2, V2 = 8, 16, 32, 32, 64
    q2 = jax.random.normal(k4, (B2, Q2, D2), dtype=jnp.float32)
    ks2 = jax.random.normal(k5, (B2, K2, D2), dtype=jnp.float32)
    v2 = jax.random.normal(k6, (B2, K2, V2), dtype=jnp.float32)
    vl2 = jax.random.randint(k7, (B2, Q2), 1, K2 + 1, dtype=jnp.int32)

    out2 = dot_product_attention(q2, ks2, v2, vl2, return_weights=False)
    out2 = jax.block_until_ready(out2)
    ref_o2, _ = _reference(q2, ks2, v2, vl2)
    np.testing.assert_allclose(np.asarray(out2), np.asarray(ref_o2),
                               atol=3e-3, rtol=3e-3)

    # Case 3: valid_lens=None (no-mask specialized kernel, no vl input DMA).
    out3, w3 = dot_product_attention(q1, ks1, v1, None)
    out3 = jax.block_until_ready(out3)
    ref_o3, ref_w3 = _reference(q1, ks1, v1, None)
    np.testing.assert_allclose(np.asarray(out3), np.asarray(ref_o3),
                               atol=3e-3, rtol=3e-3)
    np.testing.assert_allclose(np.asarray(w3), np.asarray(ref_w3),
                               atol=3e-3, rtol=3e-3)

    print("KERNEL_OK")
</pallas_src>

<mosaic_0001>
module attributes {stable_mosaic.version = 11 : i64} {
  func.func @kernel(%arg0: i32, %arg1: memref<2x8x32xf32, #tpu.memory_space<vmem>>, %arg2: memref<2x8x32xf32, #tpu.memory_space<vmem>>, %arg3: memref<2x8x32xf32, #tpu.memory_space<vmem>>, %arg4: memref<2x8x1xi32, #tpu.memory_space<vmem>>, %arg5: memref<2x8x32xf32, #tpu.memory_space<vmem>>, %arg6: memref<2x8x8xf32, #tpu.memory_space<vmem>>) attributes {dimension_semantics = [#tpu.dimension_semantics<parallel>], iteration_bounds = array<i64: 1>, scalar_prefetch = 0 : i64, scratch_operands = 0 : i64, tpu.core_type = #tpu.core_type<tc>, window_params = [{transform_indices = @transform_0, window_bounds = array<i64: 2, 8, 32>}, {transform_indices = @transform_1, window_bounds = array<i64: 2, 8, 32>}, {transform_indices = @transform_2, window_bounds = array<i64: 2, 8, 32>}, {transform_indices = @transform_3, window_bounds = array<i64: 2, 8, 1>}, {transform_indices = @transform_4, window_bounds = array<i64: 2, 8, 32>}, {transform_indices = @transform_5, window_bounds = array<i64: 2, 8, 8>}]} {
    %c0 = arith.constant 0 : index
    %c0_0 = arith.constant 0 : index
    %c0_1 = arith.constant 0 : index
    %0 = vector.load %arg1[%c0, %c0_0, %c0_1] : memref<2x8x32xf32, #tpu.memory_space<vmem>>, vector<2x8x32xf32>
    %cst = arith.constant 0.176776692 : f32
    %1 = vector.broadcast %cst : f32 to vector<2x8x32xf32>
    %2 = arith.mulf %0, %1 : vector<2x8x32xf32>
    %c0_2 = arith.constant 0 : index
    %c0_3 = arith.constant 0 : index
    %c0_4 = arith.constant 0 : index
    %3 = vector.load %arg2[%c0_2, %c0_3, %c0_4] : memref<2x8x32xf32, #tpu.memory_space<vmem>>, vector<2x8x32xf32>
    %c0_5 = arith.constant 0 : index
    %c0_6 = arith.constant 0 : index
    %c0_7 = arith.constant 0 : index
    %4 = vector.load %arg3[%c0_5, %c0_6, %c0_7] : memref<2x8x32xf32, #tpu.memory_space<vmem>>, vector<2x8x32xf32>
    "tpu.trace_start"() <{level = 10 : i32, message = "bqd,bkd->bqk"}> : () -> ()
    %cst_8 = arith.constant dense<0.000000e+00> : vector<2x8x8xf32>
    %5 = tpu.matmul %2, %3, %cst_8 {dimension_numbers = #tpu.dot_dimension_numbers<[2], [2], [1], [1], [0, 0, 0, 1, 1, 1], [0], [0]>} : vector<2x8x32xf32>, vector<2x8x32xf32>, vector<2x8x8xf32> -> vector<2x8x8xf32>
    "tpu.trace_stop"() : () -> ()
    %c0_9 = arith.constant 0 : index
    %c0_10 = arith.constant 0 : index
    %c0_11 = arith.constant 0 : index
    %6 = vector.load %arg4[%c0_9, %c0_10, %c0_11] : memref<2x8x1xi32, #tpu.memory_space<vmem>>, vector<2x8x1xi32>
    %7 = tpu.iota {dimensions = array<i32: 2>} : vector<2x8x8xi32>
    %8 = vector.broadcast %6 : vector<2x8x1xi32> to vector<2x8x8xi32>
    %9 = arith.cmpi slt, %7, %8 : vector<2x8x8xi32>
    %cst_12 = arith.constant -1.000000e+06 : f32
    %10 = vector.broadcast %cst_12 : f32 to vector<2x8x8xf32>
    %11 = arith.select %9, %5, %10 : vector<2x8x8xi1>, vector<2x8x8xf32>
    %cst_13 = arith.constant dense<0xFF800000> : vector<2x8xf32>
    %12 = vector.multi_reduction <maximumf>, %11, %cst_13 [2] : vector<2x8x8xf32> to vector<2x8xf32>
    %13 = vector.shape_cast %12 : vector<2x8xf32> to vector<2x8x1xf32>
    %14 = vector.broadcast %13 : vector<2x8x1xf32> to vector<2x8x8xf32>
    %15 = arith.subf %11, %14 : vector<2x8x8xf32>
    %16 = math.exp %15 : vector<2x8x8xf32>
    %cst_14 = arith.constant dense<0.000000e+00> : vector<2x8xf32>
    %17 = vector.multi_reduction <add>, %16, %cst_14 [2] : vector<2x8x8xf32> to vector<2x8xf32>
    %18 = vector.shape_cast %17 : vector<2x8xf32> to vector<2x8x1xf32>
    %19 = tpu.reciprocal %18 {approx = true} : vector<2x8x1xf32> -> vector<2x8x1xf32>
    %20 = vector.broadcast %19 : vector<2x8x1xf32> to vector<2x8x8xf32>
    %21 = arith.mulf %16, %20 : vector<2x8x8xf32>
    %c0_15 = arith.constant 0 : index
    %c0_16 = arith.constant 0 : index
    %c0_17 = arith.constant 0 : index
    %22 = vector.load %arg6[%c0_15, %c0_16, %c0_17] : memref<2x8x8xf32, #tpu.memory_space<vmem>>, vector<2x8x8xf32>
    tpu.vector_store %arg6[%c0_15, %c0_16, %c0_17], %21 {strides = array<i32>} : memref<2x8x8xf32, #tpu.memory_space<vmem>>, vector<2x8x8xf32>,
    "tpu.trace_start"() <{level = 10 : i32, message = "bqk,bkv->bqv"}> : () -> ()
    %cst_18 = arith.constant dense<0.000000e+00> : vector<2x8x32xf32>
    %23 = tpu.matmul %21, %4, %cst_18 {dimension_numbers = #tpu.dot_dimension_numbers<[2], [1], [1], [2], [0, 0, 0, 1, 1, 2], [0], [0]>} : vector<2x8x8xf32>, vector<2x8x32xf32>, vector<2x8x32xf32> -> vector<2x8x32xf32>
    "tpu.trace_stop"() : () -> ()
    %c0_19 = arith.constant 0 : index
    %c0_20 = arith.constant 0 : index
    %c0_21 = arith.constant 0 : index
    %24 = vector.load %arg5[%c0_19, %c0_20, %c0_21] : memref<2x8x32xf32, #tpu.memory_space<vmem>>, vector<2x8x32xf32>
    tpu.vector_store %arg5[%c0_19, %c0_20, %c0_21], %23 {strides = array<i32>} : memref<2x8x32xf32, #tpu.memory_space<vmem>>, vector<2x8x32xf32>,
    return
  }
  func.func @transform_0(%arg0: i32) -> (i32, i32, i32) {
    %c0_i32 = arith.constant 0 : i32
    %c0_i32_0 = arith.constant 0 : i32
    %c0_i32_1 = arith.constant 0 : i32
    return %arg0, %c0_i32, %c0_i32_0 : i32, i32, i32
  }
  func.func @transform_1(%arg0: i32) -> (i32, i32, i32) {
    %c0_i32 = arith.constant 0 : i32
    %c0_i32_0 = arith.constant 0 : i32
    %c0_i32_1 = arith.constant 0 : i32
    return %arg0, %c0_i32, %c0_i32_0 : i32, i32, i32
  }
  func.func @transform_2(%arg0: i32) -> (i32, i32, i32) {
    %c0_i32 = arith.constant 0 : i32
    %c0_i32_0 = arith.constant 0 : i32
    %c0_i32_1 = arith.constant 0 : i32
    return %arg0, %c0_i32, %c0_i32_0 : i32, i32, i32
  }
  func.func @transform_3(%arg0: i32) -> (i32, i32, i32) {
    %c0_i32 = arith.constant 0 : i32
    %c0_i32_0 = arith.constant 0 : i32
    %c0_i32_1 = arith.constant 0 : i32
    return %arg0, %c0_i32, %c0_i32_0 : i32, i32, i32
  }
  func.func @transform_4(%arg0: i32) -> (i32, i32, i32) {
    %c0_i32 = arith.constant 0 : i32
    %c0_i32_0 = arith.constant 0 : i32
    %c0_i32_1 = arith.constant 0 : i32
    return %arg0, %c0_i32, %c0_i32_0 : i32, i32, i32
  }
  func.func @transform_5(%arg0: i32) -> (i32, i32, i32) {
    %c0_i32 = arith.constant 0 : i32
    %c0_i32_0 = arith.constant 0 : i32
    %c0_i32_1 = arith.constant 0 : i32
    return %arg0, %c0_i32, %c0_i32_0 : i32, i32, i32
  }
}

</mosaic_0001>

<bundles_post_ra>
// kernel: tpu_custom_call.1
= control target key start
LH: loop header
LB: loop body
LE: loop exit
PB: predicated region body
PF: predicated region fallthrough
CT: control target
= control target key end

     0   :  { %11 = vsyncpa [#allocation3], 0  ;;  %s452_s0 = inlined_call_operand.vmem [shape: f32[2,8,32], index: 0, kind: input, shape index: {}]   ;;  %s453_s1 = inlined_call_operand.hbm [shape: f32[2,8,32], index: 1, kind: input, shape index: {}]   ;;  %s454_s2 = inlined_call_operand.hbm [shape: f32[2,8,32], index: 2, kind: input, shape index: {}]   ;;  %s455_s3 = inlined_call_operand.vmem [shape: s32[2,8,1], index: 3, kind: input, shape index: {}]   ;;  %s456_s4 = inlined_call_operand.hbm [shape: f32[2,8,32], index: 4, kind: output, shape index: {0}]   ;;  %s457_s5 = inlined_call_operand.hbm [shape: f32[2,8,8], index: 5, kind: output, shape index: {1}]  }
   0x1   :  { %12 = vsyncpa [#allocation6], 0 }
   0x2   :  { %13 = vsyncpa [#allocation4], 0 }
   0x3   :  { %14 = vsyncpa [#allocation9], 0  ;;  %s21_s20 = sshll.u32 %s453_s1, 4  ;;  %s365_s21 = smov [#allocation2]   ;;  %s22_s20 = int_to_ptr.hbm [resolvable:$true] %s21_s20 }
   0x4   :  { %s23_s22 = sshll.u32 %s365_s21, 4  ;;  %s34_s25 = sshll.u32 %s454_s2, 4  ;;  %s24_s22 = int_to_ptr.vmem [resolvable:$true] %s23_s22  ;;  %s35_s25 = int_to_ptr.hbm [resolvable:$true] %s34_s25 }
   0x5   :  { %s366_s26 = smov 128   ;;  %s367_s27 = smov 8  }
   0x6   :  { %29 = dma.hbm_to_vmem [thread:$0]  %s22_s20, 256, %s24_s22, [#allocation3], %s366_s26, %s366_s26, %s367_s27  }
   0x7   :  { %s368_s28 = smov [#allocation5]  }
   0x8   :  { %s36_s29 = sshll.u32 %s368_s28, 4  ;;  %s37_s29 = int_to_ptr.vmem [resolvable:$true] %s36_s29 }
   0x9   :  { %42 = dma.hbm_to_vmem [thread:$0]  %s35_s25, 256, %s37_s29, [#allocation6], %s366_s26, %s366_s26, %s367_s27  }
   0xa   :  { %357 = dma.done.wait [#allocation3], 256  }
   0xb   :  { %358 = vsyncadd [#allocation3], 4294967040 }
   0xc   :  { %359 = dma.done.wait [#allocation6], 256  }
   0xd   :  { %360 = vsyncadd [#allocation6], 4294967040  ;;  %v369_v0 = vmov 0   ;;  %vm61_vm0 = vcmask 261120   ;;  %v57_v1 = vld [vmem:[#allocation2] sm:$0xff]  ;;  %v58_v2 = vld [vmem:[#allocation2 + $0x8] sm:$0xff]  ;;  %v116_v9 = vlaneseq }
   0xe   :  { %252 = vset.pattern.permute.xlu0 %v369_v0  ;;  %v53_v3 = vld [vmem:[%s452_s0] sm:$0xff]  ;;  %239 = vmatpush.xpose.msk.msra.mxu0 %vm61_vm0, %v57_v1  ;;  %v54_v5 = vld [vmem:[%s452_s0 + $0x8] sm:$0xff]  ;;  %vm128_vm2 = vcmask 64512   ;;  %v59_v29 = vld [vmem:[#allocation5] sm:$0xff]  ;;  %s370_s0 = smov [#allocation8]   ;;  %s220_s13 = sshll.u32 %s457_s5, 4  ;;  %s221_s13 = int_to_ptr.hbm [resolvable:$true] %s220_s13 }
   0xf   :  { %241 = vmatpush.xpose.msk.msra.mxu1 %vm61_vm0, %v58_v2  ;;  %v55_v4 = vmul.f32 0.17677669, %v53_v3  ;;  %v114_v6 = vld [vmem:[%s455_s3] sm:$0xff]  ;;  %v56_v7 = vmul.f32 0.17677669, %v54_v5  ;;  %v115_v8 = vld [vmem:[%s455_s3 + $0x8] sm:$0xff]  ;;  %171 = vmatpush.msra.mxu2 %v59_v29 }
  0x10   :  { %119 = vperm.xlu0 %252, %v114_v6   ;;  %v117_v11 = vand.u32 127, %v116_v9  ;;  %v60_v30 = vld [vmem:[#allocation5 + $0x8] sm:$0xff]  ;;  %s218_s3 = sshll.u32 %s370_s0, 4  ;;  %s371_s14 = smov [#allocation7]   ;;  %s219_s3 = int_to_ptr.vmem [resolvable:$true] %s218_s3 }
  0x11   :  { %240 = vmatmul.msk.f32.vlgmr.msra.gmra.mxu0 %vm61_vm0, %v55_v4  ;;  %194 = vmatpush.msra.mxu3 %v60_v30  ;;  %s205_s15 = sshll.u32 %s371_s14, 4  ;;  %s207_s18 = sshll.u32 %s456_s4, 4  ;;  %s206_s15 = int_to_ptr.vmem [resolvable:$true] %s205_s15  ;;  %s208_s18 = int_to_ptr.hbm [resolvable:$true] %s207_s18 }
  0x12   :  { %242 = vmatmul.msk.f32.vlgmr.msra.gmra.mxu1 %vm61_vm0, %v56_v7 }
  0x18   :  { %122 = vperm.xlu0 %252, %v115_v8  }
  0x82   :  { %v120_v10 = vpop.permute.xlu0 %119 }
  0x83   :  { %vm124_vm1 = vcmp.lt.s32.totalorder %v117_v11, %v120_v10 }
  0x8a   :  { %v123_v13 = vpop.permute.xlu0 %122 }
  0x8b   :  { %vm125_vm3 = vcmp.lt.s32.totalorder %v117_v11, %v123_v13 }
  0x8e   :  { %v85_v12 = vpop.f32.mrf.mxu0 }
  0x8f   :  { %v126_v14 = vsel %vm124_vm1, %v85_v12, -1000000.0  ;;  %v111_v16 = vpop.f32.mrf.mxu1 }
  0x90   :  { %v129_v15 = vsel %vm128_vm2, %v126_v14, -inf  ;;  %v127_v17 = vsel %vm125_vm3, %v111_v16, -1000000.0 }
  0x91   :  { %130 = vmax.xlane.f32.xlu1 %v129_v15  ;;  %v132_v18 = vsel %vm128_vm2, %v127_v17, -inf }
  0x99   :  { %133 = vmax.xlane.f32.xlu1 %v132_v18 }
 0x104   :  { %v131_v19 = vpop.xlane.xlu1 %130 }
 0x105   :  { %v135_v20 = vsub.f32 %v126_v14, %v131_v19 }
 0x107   :  { %v137_v21 = vmul.f32 1.442695, %v135_v20 }
 0x109   :  { %253 = vpow2.f32 %v137_v21 }
 0x10c   :  { %v134_v22 = vpop.xlane.xlu1 %133 }
 0x10d   :  { %v136_v23 = vsub.f32 %v127_v17, %v134_v22 }
 0x10f   :  { %v254_v24 = vpop.eup %253  ;;  %v139_v25 = vmul.f32 1.442695, %v136_v23 }
 0x110   :  { %v141_v26 = vsel %vm128_vm2, %v254_v24, 0.0 }
 0x111   :  { %255 = vpow2.f32 %v139_v25  ;;  %142 = vadd.xlane.f32.xlu2 %v141_v26 }
 0x117   :  { %v256_v27 = vpop.eup %255 }
 0x118   :  { %v144_v28 = vsel %vm128_vm2, %v256_v27, 0.0 }
 0x119   :  { %145 = vadd.xlane.f32.xlu2 %v144_v28 }
 0x184   :  { %v143_v31 = vpop.xlane.xlu2 %142 }
 0x185   :  { %257 = vrcp.f32 %v143_v31 }
 0x18b   :  { %v258_v32 = vpop.eup %257 }
 0x18c   :  { %v146_v33 = vpop.xlane.xlu2 %145  ;;  %v149_v34 = vmul.f32 %v258_v32, %v254_v24 }
 0x18d   :  { %259 = vrcp.f32 %v146_v33 }
 0x18e   :  { %243 = vmatmul.msk.f32.vlgmr.msra.gmra.mxu2 %vm128_vm2, %v149_v34  ;;  %151 = vst.msk [vmem:[#allocation8] sm:$0xff] %vm128_vm2, %v149_v34 }
 0x193   :  { %v260_v35 = vpop.eup %259 }
 0x194   :  { %v150_v36 = vmul.f32 %v260_v35, %v256_v27 }
 0x196   :  { %244 = vmatmul.msk.f32.vlgmr.msra.gmra.mxu3 %vm128_vm2, %v150_v36  ;;  %152 = vst.msk [vmem:[#allocation8 + $0x8] sm:$0xff] %vm128_vm2, %v150_v36 }
 0x197   :  { %226 = dma.vmem_to_hbm [thread:$0]  %s219_s3, 256, %s221_s13, [#allocation9], %s366_s26, %s366_s26, %s367_s27  }
 0x211   :  { %v173_v37 = vpop.f32.mrf.mxu2 }
 0x212   :  { %199 = vst.msk [vmem:[#allocation7] sm:$0xff] %vm61_vm0, %v173_v37 }
 0x219   :  { %v196_v38 = vpop.f32.mrf.mxu3 }
 0x21a   :  { %200 = vst.msk [vmem:[#allocation7 + $0x8] sm:$0xff] %vm61_vm0, %v196_v38 }
 0x21b   :  { %213 = dma.vmem_to_hbm [thread:$0]  %s206_s15, 256, %s208_s18, [#allocation4], %s366_s26, %s366_s26, %s367_s27  }
 0x21c   :  { %361 = dma.done.wait [#allocation4], 256  }
 0x21d   :  { %362 = vsyncadd [#allocation4], 4294967040 }
 0x21e   :  { %363 = dma.done.wait [#allocation9], 256  }
 0x21f   :  { %364 = vsyncadd [#allocation9], 4294967040 }
 0x220   :  { %235 = vsyncpa [#allocation3], 1 }
 0x221   :  { %236 = vsyncpa [#allocation6], 1 }
 0x222   :  { %237 = vsyncpa [#allocation4], 1 }
 0x223   :  { %238 = vsyncpa [#allocation9], 1 }

</bundles_post_ra>
